<compile_context>
chip_gen: v7x
topology: tpu7x:2x2x1
jax: 0.10.0
libtpu: 0.0.40
codegen_flags: <defaults>
</compile_context>

<pallas_src>
import functools

import jax
import jax.numpy as jnp
import numpy as np
from jax import lax
from jax.experimental import pallas as pl
from jax.experimental.pallas import tpu as pltpu


def _round_up(v, m):
    return ((v + m - 1) // m) * m


def _tile(dim, want, align):
    """Pick an aligned tile size and the padded dimension it divides."""
    dim_a = _round_up(dim, align)
    t = min(_round_up(want, align), dim_a)
    return t, _round_up(dim_a, t)


def _pad2d(arr, rows, cols):
    r, c = arr.shape
    if r == rows and c == cols:
        return arr
    return jnp.pad(arr, ((0, rows - r), (0, cols - c)))


# ---------------------------------------------------------------------------
# Kernel 1: a = scale * (x @ Wa^T)        (M, K) x (r_pad, K) -> (M, r_pad)
# ---------------------------------------------------------------------------
def _lora_a_kernel(x_ref, wa_ref, a_ref, acc_ref, *, scale):
    k = pl.program_id(1)

    @pl.when(k == 0)
    def _():
        acc_ref[...] = jnp.zeros_like(acc_ref)

    # Contract on K (last dim of both) -> (tm, r_pad); f32 MXU accumulation.
    acc_ref[...] += lax.dot_general(
        x_ref[...], wa_ref[...],
        dimension_numbers=(((1,), (1,)), ((), ())),
        preferred_element_type=jnp.float32)

    @pl.when(k == pl.num_programs(1) - 1)
    def _():
        a_ref[...] = (jnp.float32(scale) * acc_ref[...]).astype(a_ref.dtype)


# ---------------------------------------------------------------------------
# Kernel 2: y = x @ W^T + a @ Wb^T + b    (fused base matmul + LoRA + bias)
# ---------------------------------------------------------------------------
def _lora_main_kernel(x_ref, w_ref, b_ref, a_ref, wb_ref, o_ref, acc_ref):
    k = pl.program_id(2)

    @pl.when(k == 0)
    def _():
        acc_ref[...] = jnp.zeros_like(acc_ref)

    # x:(tm,tk) . W:(tn,tk) contracting on K -> (tm, tn), f32 accumulator.
    acc_ref[...] += lax.dot_general(
        x_ref[...], w_ref[...],
        dimension_numbers=(((1,), (1,)), ((), ())),
        preferred_element_type=jnp.float32)

    @pl.when(k == pl.num_programs(2) - 1)
    def _():
        # LoRA correction + bias only once per (i, j) output tile.
        lora = lax.dot_general(
            a_ref[...], wb_ref[...],
            dimension_numbers=(((1,), (1,)), ((), ())),
            preferred_element_type=jnp.float32)
        o_ref[...] = (acc_ref[...] + lora
                      + b_ref[...].astype(jnp.float32)).astype(o_ref.dtype)


def lora_forward(x, w, b, w_a, w_b, *, r, alpha, tm=256, tn=512, tk=512):
    """x: (batch, seq, in); w: (out, in); b: (out,); w_a: (r, in); w_b: (out, r)."""
    batch, seq, in_f = x.shape
    out_f = w.shape[0]
    scale = alpha // r                      # integer floor-div, same as PyTorch

    M, K, N = batch * seq, in_f, out_f
    tm_, Mp = _tile(M, tm, 8)               # sublane axis
    tk_, Kp = _tile(K, tk, 128)             # lane axis (contraction)
    tn_, Np = _tile(N, tn, 128)             # lane axis (output)
    r_pad = _round_up(max(r, 1), 128)       # lane-dense LoRA rank

    # Zero-padding (no-ops when shapes already divide). No transposes.
    x2d = _pad2d(x.reshape(M, K), Mp, Kp)
    w_p = _pad2d(w, Np, Kp)                 # (out, in) natural layout
    b_p = _pad2d(b.reshape(1, N), 1, Np)
    wa_p = _pad2d(w_a, r_pad, Kp)           # (r, in)  -> (r_pad, Kp)
    wb_p = _pad2d(w_b, Np, r_pad)           # (out, r) -> (Np, r_pad)

    gm, gn, gk = Mp // tm_, Np // tn_, Kp // tk_

    # ---- kernel 1: LoRA down-projection (FLOP-trivial, hoisted) ------------
    a = pl.pallas_call(
        functools.partial(_lora_a_kernel, scale=scale),
        out_shape=jax.ShapeDtypeStruct((Mp, r_pad), x.dtype),
        grid_spec=pltpu.PrefetchScalarGridSpec(
            num_scalar_prefetch=0,
            grid=(gm, gk),
            in_specs=[
                pl.BlockSpec((tm_, tk_), lambda i, k: (i, k)),      # x
                pl.BlockSpec((r_pad, tk_), lambda i, k: (0, k)),    # Wa
            ],
            out_specs=pl.BlockSpec((tm_, r_pad), lambda i, k: (i, 0)),
            scratch_shapes=[pltpu.VMEM((tm_, r_pad), jnp.float32)],
        ),
        compiler_params=pltpu.CompilerParams(
            dimension_semantics=("parallel", "arbitrary")),
    )(x2d, wa_p)

    # ---- kernel 2: fused base matmul + bias + low-rank correction ----------
    out = pl.pallas_call(
        _lora_main_kernel,
        out_shape=jax.ShapeDtypeStruct((Mp, Np), x.dtype),
        grid_spec=pltpu.PrefetchScalarGridSpec(
            num_scalar_prefetch=0,
            grid=(gm, gn, gk),
            in_specs=[
                pl.BlockSpec((tm_, tk_), lambda i, j, k: (i, k)),    # x
                pl.BlockSpec((tn_, tk_), lambda i, j, k: (j, k)),    # W (out,in)
                pl.BlockSpec((1, tn_), lambda i, j, k: (0, j)),      # bias
                pl.BlockSpec((tm_, r_pad), lambda i, j, k: (i, 0)),  # a
                pl.BlockSpec((tn_, r_pad), lambda i, j, k: (j, 0)),  # Wb
            ],
            out_specs=pl.BlockSpec((tm_, tn_), lambda i, j, k: (i, j)),
            scratch_shapes=[pltpu.VMEM((tm_, tn_), jnp.float32)],
        ),
        compiler_params=pltpu.CompilerParams(
            dimension_semantics=("parallel", "parallel", "arbitrary")),
    )(x2d, w_p, b_p, a, wb_p)

    return out[:M, :N].reshape(batch, seq, N)


if __name__ == "__main__":
    def _ref(x, w, b, w_a, w_b, scale):
        xn = np.asarray(x, dtype=np.float64)
        wn = np.asarray(w, dtype=np.float64)
        bn = np.asarray(b, dtype=np.float64)
        wan = np.asarray(w_a, dtype=np.float64)
        wbn = np.asarray(w_b, dtype=np.float64)
        return xn @ wn.T + bn + scale * ((xn @ wan.T) @ wbn.T)

    key = jax.random.PRNGKey(0)

    # --- check 1: small shapes matching the module --------------------------
    batch, seq, in_f, out_f, r, alpha = 2, 8, 32, 32, 4, 8
    kx, kw, kb, ka, kbb, key = jax.random.split(key, 6)
    x = jax.random.normal(kx, (batch, seq, in_f), dtype=jnp.float32)
    w = jax.random.normal(kw, (out_f, in_f), dtype=jnp.float32) * 0.1
    b = jax.random.normal(kb, (out_f,), dtype=jnp.float32) * 0.1
    w_a = jax.random.normal(ka, (r, in_f), dtype=jnp.float32) * 0.1
    w_b = jax.random.normal(kbb, (out_f, r), dtype=jnp.float32) * 0.1

    y = jax.block_until_ready(lora_forward(x, w, b, w_a, w_b, r=r, alpha=alpha))
    ref = _ref(x, w, b, w_a, w_b, alpha // r)
    assert np.allclose(np.asarray(y, np.float64), ref, atol=1e-3, rtol=1e-3), \
        "mismatch vs reference (small)"

    # --- check 2: forces a real multi-tile (M, N, K) grid + padding ---------
    batch, seq, in_f, out_f, r, alpha = 2, 8, 288, 256, 4, 8
    kx, kw, kb, ka, kbb, key = jax.random.split(key, 6)
    x = jax.random.normal(kx, (batch, seq, in_f), dtype=jnp.float32)
    w = jax.random.normal(kw, (out_f, in_f), dtype=jnp.float32) * 0.1
    b = jax.random.normal(kb, (out_f,), dtype=jnp.float32) * 0.1
    w_a = jax.random.normal(ka, (r, in_f), dtype=jnp.float32) * 0.1
    w_b = jax.random.normal(kbb, (out_f, r), dtype=jnp.float32) * 0.1

    y = jax.block_until_ready(
        lora_forward(x, w, b, w_a, w_b, r=r, alpha=alpha, tm=8, tn=128, tk=128))
    ref = _ref(x, w, b, w_a, w_b, alpha // r)
    assert np.allclose(np.asarray(y, np.float64), ref, atol=1e-3, rtol=1e-3), \
        "mismatch vs reference (tiled)"

    print("KERNEL_OK")
</pallas_src>

<mosaic_0001>
module attributes {stable_mosaic.version = 11 : i64} {
  func.func @_lora_a_kernel(%arg0: i32, %arg1: i32, %arg2: memref<16x128xf32, #tpu.memory_space<vmem>>, %arg3: memref<128x128xf32, #tpu.memory_space<vmem>>, %arg4: memref<16x128xf32, #tpu.memory_space<vmem>>, %arg5: memref<16x128xf32, #tpu.memory_space<vmem>>) attributes {dimension_semantics = [#tpu.dimension_semantics<parallel>, #tpu.dimension_semantics<arbitrary>], iteration_bounds = array<i64: 1, 1>, scalar_prefetch = 0 : i64, scratch_operands = 1 : i64, tpu.core_type = #tpu.core_type<tc>, window_params = [{transform_indices = @transform_0, window_bounds = array<i64: 16, 128>}, {transform_indices = @transform_1, window_bounds = array<i64: 128, 128>}, {transform_indices = @transform_2, window_bounds = array<i64: 16, 128>}]} {
    %c0_i32 = arith.constant 0 : i32
    %0 = arith.cmpi eq, %arg1, %c0_i32 : i32
    %1 = arith.extui %0 : i1 to i32
    %c0_i32_0 = arith.constant 0 : i32
    %2 = arith.cmpi ne, %1, %c0_i32_0 : i32
    scf.if %2 {
      %cst_10 = arith.constant 0.000000e+00 : f32
      %12 = vector.broadcast %cst_10 : f32 to vector<16x128xf32>
      %c0_11 = arith.constant 0 : index
      %c0_12 = arith.constant 0 : index
      %13 = vector.load %arg5[%c0_11, %c0_12] : memref<16x128xf32, #tpu.memory_space<vmem>>, vector<16x128xf32>
      tpu.vector_store %arg5[%c0_11, %c0_12], %12 {strides = array<i32>} : memref<16x128xf32, #tpu.memory_space<vmem>>, vector<16x128xf32>,
    } else {
    }
    %c0 = arith.constant 0 : index
    %c0_1 = arith.constant 0 : index
    %3 = vector.load %arg5[%c0, %c0_1] : memref<16x128xf32, #tpu.memory_space<vmem>>, vector<16x128xf32>
    %c0_2 = arith.constant 0 : index
    %c0_3 = arith.constant 0 : index
    %4 = vector.load %arg2[%c0_2, %c0_3] : memref<16x128xf32, #tpu.memory_space<vmem>>, vector<16x128xf32>
    %c0_4 = arith.constant 0 : index
    %c0_5 = arith.constant 0 : index
    %5 = vector.load %arg3[%c0_4, %c0_5] : memref<128x128xf32, #tpu.memory_space<vmem>>, vector<128x128xf32>
    %cst = arith.constant dense<0.000000e+00> : vector<16x128xf32>
    %6 = tpu.matmul %4, %5, %cst {dimension_numbers = #tpu.dot_dimension_numbers<[1], [1], [0], [0], [0, 0, 1, 0], [], []>} : vector<16x128xf32>, vector<128x128xf32>, vector<16x128xf32> -> vector<16x128xf32>
    %7 = arith.addf %3, %6 : vector<16x128xf32>
    %c0_6 = arith.constant 0 : index
    %c0_7 = arith.constant 0 : index
    %8 = vector.load %arg5[%c0_6, %c0_7] : memref<16x128xf32, #tpu.memory_space<vmem>>, vector<16x128xf32>
    tpu.vector_store %arg5[%c0_6, %c0_7], %7 {strides = array<i32>} : memref<16x128xf32, #tpu.memory_space<vmem>>, vector<16x128xf32>,
    %c0_i32_8 = arith.constant 0 : i32
    %9 = arith.cmpi eq, %arg1, %c0_i32_8 : i32
    %10 = arith.extui %9 : i1 to i32
    %c0_i32_9 = arith.constant 0 : i32
    %11 = arith.cmpi ne, %10, %c0_i32_9 : i32
    scf.if %11 {
      %c0_10 = arith.constant 0 : index
      %c0_11 = arith.constant 0 : index
      %12 = vector.load %arg5[%c0_10, %c0_11] : memref<16x128xf32, #tpu.memory_space<vmem>>, vector<16x128xf32>
      %cst_12 = arith.constant 2.000000e+00 : f32
      %13 = vector.broadcast %cst_12 : f32 to vector<16x128xf32>
      %14 = arith.mulf %13, %12 : vector<16x128xf32>
      %c0_13 = arith.constant 0 : index
      %c0_14 = arith.constant 0 : index
      %15 = vector.load %arg4[%c0_13, %c0_14] : memref<16x128xf32, #tpu.memory_space<vmem>>, vector<16x128xf32>
      tpu.vector_store %arg4[%c0_13, %c0_14], %14 {strides = array<i32>} : memref<16x128xf32, #tpu.memory_space<vmem>>, vector<16x128xf32>,
    } else {
    }
    return
  }
  func.func @transform_0(%arg0: i32, %arg1: i32) -> (i32, i32) {
    %c0_i32 = arith.constant 0 : i32
    return %arg0, %arg1 : i32, i32
  }
  func.func @transform_1(%arg0: i32, %arg1: i32) -> (i32, i32) {
    %c0_i32 = arith.constant 0 : i32
    %c0_i32_0 = arith.constant 0 : i32
    return %c0_i32, %arg1 : i32, i32
  }
  func.func @transform_2(%arg0: i32, %arg1: i32) -> (i32, i32) {
    %c0_i32 = arith.constant 0 : i32
    %c0_i32_0 = arith.constant 0 : i32
    return %arg0, %c0_i32 : i32, i32
  }
}

</mosaic_0001>

<bundles_post_ra>
// kernel: tpu_custom_call.1
= control target key start
LH: loop header
LB: loop body
LE: loop exit
PB: predicated region body
PF: predicated region fallthrough
CT: control target
= control target key end

     0   :  { %7 = vsyncpa [#allocation4], 0  ;;  %s399_s0 = inlined_call_operand.hbm [shape: f32[16,128], index: 0, kind: input, shape index: {}]   ;;  %s400_s1 = inlined_call_operand.hbm [shape: f32[128,128], index: 1, kind: input, shape index: {}]   ;;  %s401_s2 = inlined_call_operand.hbm [shape: f32[16,128], index: 2, kind: output, shape index: {}]  }
   0x1   :  { %8 = vsyncpa [#allocation7], 0 }
   0x2   :  { %9 = vsyncpa [#allocation5], 0  ;;  %s334_s9 = smov [#allocation3]   ;;  %s262_s13 = scalar_lea.hbm %s399_s0, 256 }
   0x3   :  { %s15_s10 = sshll.u32 %s334_s9, 4  ;;  %p263_p0 = scmp.ne.s32.totalorder %s399_s0, %s262_s13  ;;  %s16_s10 = int_to_ptr.vmem [resolvable:$true] %s15_s10 }
   0x4   :  { %p266_p1 = scmp.lt.u32.totalorder %s262_s13, %s399_s0 }
   0x6   :  { %p268_p2 = pnand %p266_p1, %p263_p0 }
   0x8   :  { %271 = shalt.err (!%p268_p2)
}
   0x9   :  { %s272_s18 = scalar_lea.vmem %s16_s10, 256  ;;  %p277_p4 = scmp.lt.s32.totalorder %s16_s10, %s16_s10 }
   0xa   :  { %p273_p3 = scmp.ne.s32.totalorder %s16_s10, %s272_s18  ;;  %p278_p5 = scmp.lt.s32.totalorder %s272_s18, %s272_s18 }
   0xc   :  { %p279_p6 = por %p278_p5, %p277_p4 }
   0xe   :  { %p280_p7 = pnand %p279_p6, %p273_p3 }
  0x10   :  { %283 = shalt.err (!%p280_p7)
}
  0x11   :  { %s335_s19 = smov 128   ;;  %s336_s20 = smov 8  }
  0x12   :  { %21 = dma.hbm_to_vmem [thread:$0]  %s399_s0, 256, %s16_s10, [#allocation4], %s335_s19, %s335_s19, %s336_s20  }
  0x13   :  { %s337_s23 = smov [#allocation6]   ;;  %s284_s27 = scalar_lea.hbm %s400_s1, 2048 }
  0x14   :  { %s27_s24 = sshll.u32 %s337_s23, 4  ;;  %p285_p8 = scmp.ne.s32.totalorder %s400_s1, %s284_s27  ;;  %s28_s24 = int_to_ptr.vmem [resolvable:$true] %s27_s24 }
  0x15   :  { %p288_p9 = scmp.lt.u32.totalorder %s284_s27, %s400_s1 }
  0x17   :  { %p290_p10 = pnand %p288_p9, %p285_p8 }
  0x19   :  { %293 = shalt.err (!%p290_p10)
}
  0x1a   :  { %s294_s4 = scalar_lea.vmem %s28_s24, 2048  ;;  %p299_p12 = scmp.lt.s32.totalorder %s28_s24, %s28_s24 }
  0x1b   :  { %p295_p11 = scmp.ne.s32.totalorder %s28_s24, %s294_s4  ;;  %p300_p13 = scmp.lt.s32.totalorder %s294_s4, %s294_s4 }
  0x1d   :  { %p301_p0 = por %p300_p13, %p299_p12 }
  0x1f   :  { %p302_p1 = pnand %p301_p0, %p295_p11 }
  0x21   :  { %305 = shalt.err (!%p302_p1)
}
  0x22   :  { %33 = dma.hbm_to_vmem [thread:$0]  %s400_s1, 2048, %s28_s24, [#allocation7], %s335_s19, %s335_s19, %s336_s20  }
  0x23   :  { %328 = dma.done.wait [#allocation4], 256  }
  0x24   :  { %329 = vsyncadd [#allocation4], 4294967040 }
  0x25   :  { %330 = dma.done.wait [#allocation7], 2048  }
  0x26   :  { %331 = vsyncadd [#allocation7], 4294965248  ;;  %v50_v0 = vld [vmem:[#allocation6] sm:$0xff]  ;;  %v51_v1 = vld [vmem:[#allocation6 + $0x8] sm:$0xff]  ;;  %s338_s1 = smov [#allocation8]  }
  0x27   :  { %v52_v2 = vld [vmem:[#allocation6 + $0x10] sm:$0xff]  ;;  %v225_v3 = vpack.c.bf16 %v51_v1, %v50_v0  ;;  %v53_v4 = vld [vmem:[#allocation6 + $0x18] sm:$0xff]  ;;  %v54_v7 = vld [vmem:[#allocation6 + $0x20] sm:$0xff]  ;;  %s159_s6 = sshll.u32 %s338_s1, 4  ;;  %s160_s6 = int_to_ptr.vmem [resolvable:$true] %s159_s6 }
  0x28   :  { %v229_v5 = vpack.c.bf16 %v53_v4, %v52_v2  ;;  %v48_v6 = vld [vmem:[#allocation3] sm:$0xff]  ;;  %v55_v8 = vld [vmem:[#allocation6 + $0x28] sm:$0xff]  ;;  %v57_v11 = vld [vmem:[#allocation6 + $0x38] sm:$0xff]  ;;  %s306_s7 = scalar_lea.vmem %s160_s6, 256  ;;  %p311_p3 = scmp.lt.s32.totalorder %s160_s6, %s160_s6 }
  0x29   :  { %226 = vmatprep.subr.bf16.mxu0 %v225_v3  ;;  %222 = vmatprep.mubr.f32.mxu0 %v48_v6  ;;  %v233_v9 = vpack.c.bf16 %v55_v8, %v54_v7  ;;  %v56_v10 = vld [vmem:[#allocation6 + $0x30] sm:$0xff]  ;;  %v58_v13 = vld [vmem:[#allocation6 + $0x40] sm:$0xff]  ;;  %v59_v14 = vld [vmem:[#allocation6 + $0x48] sm:$0xff]  ;;  %p307_p2 = scmp.ne.s32.totalorder %s160_s6, %s306_s7  ;;  %p312_p4 = scmp.lt.s32.totalorder %s306_s7, %s306_s7 }
  0x2a   :  { %228 = vmatpush3.bf16.xpose.msra.mxu0 %v225_v3  ;;  %v237_v12 = vpack.c.bf16 %v57_v11, %v56_v10  ;;  %v241_v15 = vpack.c.bf16 %v59_v14, %v58_v13  ;;  %v60_v16 = vld [vmem:[#allocation6 + $0x50] sm:$0xff]  ;;  %v61_v17 = vld [vmem:[#allocation6 + $0x58] sm:$0xff]  ;;  %v62_v19 = vld [vmem:[#allocation6 + $0x60] sm:$0xff] }
  0x2b   :  { %230 = vmatprep.subr.bf16.mxu0 %v229_v5  ;;  %v245_v18 = vpack.c.bf16 %v61_v17, %v60_v16  ;;  %v63_v20 = vld [vmem:[#allocation6 + $0x68] sm:$0xff]  ;;  %v64_v22 = vld [vmem:[#allocation6 + $0x70] sm:$0xff]  ;;  %v65_v23 = vld [vmem:[#allocation6 + $0x78] sm:$0xff]  ;;  %p313_p5 = por %p312_p4, %p311_p3 }
  0x2c   :  { %v249_v21 = vpack.c.bf16 %v63_v20, %v62_v19  ;;  %v253_v24 = vpack.c.bf16 %v65_v23, %v64_v22  ;;  %v49_v25 = vld [vmem:[#allocation3 + $0x8] sm:$0xff] }
  0x2d   :  { %p314_p6 = pnand %p313_p5, %p307_p2 }
  0x32   :  { %232 = vmatpush3.bf16.xpose.msra.mxu0 %v229_v5 }
  0x33   :  { %234 = vmatprep.subr.bf16.mxu0 %v233_v9 }
  0x3a   :  { %236 = vmatpush3.bf16.xpose.msra.mxu0 %v233_v9 }
  0x3b   :  { %238 = vmatprep.subr.bf16.mxu0 %v237_v12 }
  0x42   :  { %240 = vmatpush3.bf16.xpose.msra.mxu0 %v237_v12 }
  0x43   :  { %242 = vmatprep.subr.bf16.mxu0 %v241_v15 }
  0x4a   :  { %244 = vmatpush3.bf16.xpose.msra.mxu0 %v241_v15 }
  0x4b   :  { %246 = vmatprep.subr.bf16.mxu0 %v245_v18 }
  0x52   :  { %248 = vmatpush3.bf16.xpose.msra.mxu0 %v245_v18 }
  0x53   :  { %250 = vmatprep.subr.bf16.mxu0 %v249_v21 }
  0x5a   :  { %252 = vmatpush3.bf16.xpose.msra.mxu0 %v249_v21 }
  0x5b   :  { %254 = vmatprep.subr.bf16.mxu0 %v253_v24 }
  0x62   :  { %256 = vmatpush3.bf16.xpose.msra.mxu0 %v253_v24 }
  0x69   :  { %223 = vmatmul.mubr.f32.vlgmr.msra.gmra.mrb[0].mxu0 %v49_v25 }
 0x13c   :  { %v224_v26 = vpop.f32.mrb[0].mxu0 }
 0x13d   :  { %v151_v27 = vmul.f32 2.0, %v224_v26  ;;  %v132_v28 = vpop.f32.mrb[1].mxu0 }
 0x13e   :  { %v150_v29 = vmul.f32 2.0, %v132_v28 }
 0x13f   :  { %153 = vst [vmem:[#allocation8 + $0x8] sm:$0xff] %v151_v27 }
 0x140   :  { %152 = vst [vmem:[#allocation8] sm:$0xff] %v150_v29 }
 0x141   :  { %317 = shalt.err (!%p314_p6)
}
 0x142   :  { %s318_s10 = scalar_lea.hbm %s401_s2, 256 }
 0x143   :  { %p319_p7 = scmp.ne.s32.totalorder %s401_s2, %s318_s10  ;;  %p322_p8 = scmp.lt.u32.totalorder %s318_s10, %s401_s2 }
 0x145   :  { %p324_p9 = pnand %p322_p8, %p319_p7 }
 0x147   :  { %327 = shalt.err (!%p324_p9)
}
 0x148   :  { %165 = dma.vmem_to_hbm [thread:$0]  %s160_s6, 256, %s401_s2, [#allocation5], %s335_s19, %s335_s19, %s336_s20  }
 0x149   :  { %332 = dma.done.wait [#allocation5], 256  }
 0x14a   :  { %333 = vsyncadd [#allocation5], 4294967040 }
 0x14b   :  { %169 = vsyncpa [#allocation4], 1 }
 0x14c   :  { %170 = vsyncpa [#allocation7], 1 }
 0x14d   :  { %171 = vsyncpa [#allocation5], 1 }

</bundles_post_ra>
